<compile_context>
chip_gen: v5e
topology: v5e:2x2
jax: 0.10.0
libtpu: 0.0.40
codegen_flags: <defaults>
</compile_context>

<pallas_src>
import functools
import math

import jax
import jax.numpy as jnp
from jax import lax
from jax.experimental import pallas as pl
from jax.experimental.pallas import tpu as pltpu


def _round_up(x, m):
    return ((x + m - 1) // m) * m


def _pad2d(a, rows, cols):
    r, c = a.shape
    if r == rows and c == cols:
        return a
    return jnp.pad(a, ((0, rows - r), (0, cols - c)))


# VMEM budgets, conservative for v7x (64 MiB physical VMEM per TensorCore).
_FUSED_VMEM_BUDGET = 40 << 20     # use the single-call fused path while it fits
_VMEM_LIMIT_CAP = 60 << 20
_VMEM_LIMIT_FLOOR = 32 << 20


def _vmem_limit(estimate):
    return int(min(max(estimate + (8 << 20), _VMEM_LIMIT_FLOOR), _VMEM_LIMIT_CAP))


def _fused_footprint(M_pad, K_pad, tk, tn, x_bytes, w_bytes, o_bytes):
    """Rough VMEM footprint of the fused Linear(+BN) pallas_call."""
    nk = K_pad // tk
    multi_k = nk > 1
    xk = tk if multi_k else K_pad
    total = 2 * M_pad * xk * x_bytes            # x blocks (double buffered)
    total += 2 * xk * tn * w_bytes              # weight blocks
    total += 2 * M_pad * tn * o_bytes           # output blocks
    total += 6 * tn * 4                         # bias / gamma / beta
    if multi_k:
        total += M_pad * tn * 4                 # f32 accumulator scratch
    if x_bytes != w_bytes:
        total += M_pad * xk * w_bytes           # in-kernel cast temporary
    total += 2 * M_pad * tn * 4                 # f32 epilogue temporaries
    return total


# ----------------------------------------------------------------------------
# BatchNorm epilogue (training-mode, biased variance) for the fused path.
# Padded rows of y are exactly the bias row (zero-padded x rows), so the stats
# are corrected in closed form — no (M, N) row-mask build.
# ----------------------------------------------------------------------------
def _bn_epilogue(y, bias, gamma, beta, *, m_valid, eps):
    n_pad = y.shape[0] - m_valid
    inv_m = 1.0 / m_valid
    s = jnp.sum(y, axis=0, keepdims=True)
    if n_pad:
        s = s - n_pad * bias
    mean = s * inv_m
    d = y - mean
    # Mean-subtracted second pass: avoids E[x^2]-E[x]^2 catastrophic cancellation.
    ss = jnp.sum(d * d, axis=0, keepdims=True)
    if n_pad:
        db = bias - mean
        ss = ss - n_pad * (db * db)
    var = ss * inv_m
    return d * lax.rsqrt(var + eps) * gamma + beta


# ----------------------------------------------------------------------------
# Fused Linear (+ optional BatchNorm) — full (padded) batch resident in VMEM.
# ----------------------------------------------------------------------------
def _fused_single_k_kernel(x_ref, w_ref, b_ref, g_ref, beta_ref, o_ref, *,
                           apply_bn, m_valid, eps):
    x = x_ref[...]
    w = w_ref[...]
    if x.dtype != w.dtype:
        x = x.astype(w.dtype)        # in-kernel cast (keeps x f32 in HBM)
    bias = b_ref[...].astype(jnp.float32)
    y = jnp.dot(x, w, preferred_element_type=jnp.float32) + bias
    if apply_bn:
        y = _bn_epilogue(y, bias, g_ref[...].astype(jnp.float32),
                         beta_ref[...].astype(jnp.float32),
                         m_valid=m_valid, eps=eps)
    o_ref[...] = y.astype(o_ref.dtype)


def _fused_multi_k_kernel(x_ref, w_ref, b_ref, g_ref, beta_ref, o_ref, acc_ref, *,
                          apply_bn, m_valid, eps):
    k = pl.program_id(1)

    @pl.when(k == 0)
    def _():
        acc_ref[...] = jnp.zeros_like(acc_ref)

    x = x_ref[...]
    w = w_ref[...]
    if x.dtype != w.dtype:
        x = x.astype(w.dtype)
    acc_ref[...] += jnp.dot(x, w, preferred_element_type=jnp.float32)

    @pl.when(k == pl.num_programs(1) - 1)
    def _():
        bias = b_ref[...].astype(jnp.float32)
        y = acc_ref[...] + bias
        if apply_bn:
            y = _bn_epilogue(y, bias, g_ref[...].astype(jnp.float32),
                             beta_ref[...].astype(jnp.float32),
                             m_valid=m_valid, eps=eps)
        o_ref[...] = y.astype(o_ref.dtype)


def _linear_bn_fused(x_p, w_p, b_p, g_p, beta_p, *, m_valid, apply_bn, eps,
                     tk, tn, out_dtype, vmem_bytes):
    M_pad, K_pad = x_p.shape
    _, N_pad = w_p.shape
    nj = N_pad // tn
    nk = K_pad // tk
    static = dict(apply_bn=apply_bn, m_valid=m_valid, eps=eps)

    if nk == 1:
        kernel = functools.partial(_fused_single_k_kernel, **static)
        grid = (nj,)
        in_specs = [
            pl.BlockSpec((M_pad, K_pad), lambda j: (0, 0)),   # x resident across j
            pl.BlockSpec((K_pad, tn), lambda j: (0, j)),
            pl.BlockSpec((1, tn), lambda j: (0, j)),
            pl.BlockSpec((1, tn), lambda j: (0, j)),
            pl.BlockSpec((1, tn), lambda j: (0, j)),
        ]
        out_specs = pl.BlockSpec((M_pad, tn), lambda j: (0, j))
        scratch = []
        dims = ("parallel",)
    else:
        kernel = functools.partial(_fused_multi_k_kernel, **static)
        grid = (nj, nk)
        in_specs = [
            pl.BlockSpec((M_pad, tk), lambda j, k: (0, k)),
            pl.BlockSpec((tk, tn), lambda j, k: (k, j)),
            pl.BlockSpec((1, tn), lambda j, k: (0, j)),
            pl.BlockSpec((1, tn), lambda j, k: (0, j)),
            pl.BlockSpec((1, tn), lambda j, k: (0, j)),
        ]
        out_specs = pl.BlockSpec((M_pad, tn), lambda j, k: (0, j))
        scratch = [pltpu.VMEM((M_pad, tn), jnp.float32)]
        dims = ("parallel", "arbitrary")

    return pl.pallas_call(
        kernel,
        out_shape=jax.ShapeDtypeStruct((M_pad, N_pad), out_dtype),
        grid_spec=pltpu.PrefetchScalarGridSpec(
            num_scalar_prefetch=0,
            grid=grid,
            in_specs=in_specs,
            out_specs=out_specs,
            scratch_shapes=scratch,
        ),
        compiler_params=pltpu.CompilerParams(
            dimension_semantics=dims, vmem_limit_bytes=vmem_bytes),
    )(x_p, w_p, b_p, g_p, beta_p)


# ----------------------------------------------------------------------------
# Large-batch fallback: weight-resident Linear tiled over M (no K grid axis,
# no accumulator), with BN sum / sum-of-squares accumulated in the epilogue,
# followed by an M-tiled normalization pass (VMEM-safe on v7x's 64 MiB).
# ----------------------------------------------------------------------------
def _linear_resident_kernel(x_ref, w_ref, b_ref, o_ref, *maybe_stat):
    x = x_ref[...]
    w = w_ref[...]
    if x.dtype != w.dtype:
        x = x.astype(w.dtype)
    bias = b_ref[...].astype(jnp.float32)
    y = jnp.dot(x, w, preferred_element_type=jnp.float32) + bias
    o_ref[...] = y.astype(o_ref.dtype)
    if maybe_stat:
        # TODO(synk): one-pass E[x^2]-E[x]^2 here; switch to Welford if features
        # with very large mean/std ratios are expected.
        stat_ref, = maybe_stat

        @pl.when(pl.program_id(1) == 0)
        def _():
            stat_ref[...] = jnp.zeros_like(stat_ref)

        stat_ref[0:1, :] += jnp.sum(y, axis=0, keepdims=True)
        stat_ref[1:2, :] += jnp.sum(y * y, axis=0, keepdims=True)


def _linear_resident(x_p, w_p, b_p, *, tm, tn, out_dtype, want_stats, vmem_bytes):
    M_pad, K_pad = x_p.shape
    _, N_pad = w_p.shape
    nj = N_pad // tn
    mi = M_pad // tm
    # Grid order (j outer, i inner): the (K_pad, tn) weight block stays resident
    # for the whole M sweep; every byte of x and W is read from HBM exactly once
    # when nj == 1 (the typical bottleneck_dim <= 256 case).
    grid = (nj, mi)
    in_specs = [
        pl.BlockSpec((tm, K_pad), lambda j, i: (i, 0)),
        pl.BlockSpec((K_pad, tn), lambda j, i: (0, j)),
        pl.BlockSpec((1, tn), lambda j, i: (0, j)),
    ]
    y_spec = pl.BlockSpec((tm, tn), lambda j, i: (i, j))
    y_shape = jax.ShapeDtypeStruct((M_pad, N_pad), out_dtype)

    if want_stats:
        out_shape = (y_shape, jax.ShapeDtypeStruct((8, N_pad), jnp.float32))
        out_specs = (y_spec, pl.BlockSpec((8, tn), lambda j, i: (0, j)))
        dims = ("parallel", "arbitrary")   # stats accumulate along the M axis
    else:
        out_shape = y_shape
        out_specs = y_spec
        dims = ("parallel", "parallel")

    return pl.pallas_call(
        _linear_resident_kernel,
        out_shape=out_shape,
        grid_spec=pltpu.PrefetchScalarGridSpec(
            num_scalar_prefetch=0,
            grid=grid,
            in_specs=in_specs,
            out_specs=out_specs,
        ),
        compiler_params=pltpu.CompilerParams(
            dimension_semantics=dims, vmem_limit_bytes=vmem_bytes),
    )(x_p, w_p, b_p)


def _bn_apply_kernel(y_ref, stat_ref, b_ref, g_ref, beta_ref, o_ref, *,
                     m_valid, n_pad_rows, eps):
    y = y_ref[...].astype(jnp.float32)
    bias = b_ref[...].astype(jnp.float32)
    s = stat_ref[0:1, :]
    ss = stat_ref[1:2, :]
    if n_pad_rows:
        # Padded rows of the linear output equal the bias row exactly.
        s = s - n_pad_rows * bias
        ss = ss - n_pad_rows * (bias * bias)
    inv_m = 1.0 / m_valid
    mean = s * inv_m
    var = ss * inv_m - mean * mean
    inv = lax.rsqrt(jnp.maximum(var, 0.0) + eps)
    o_ref[...] = ((y - mean) * inv * g_ref[...].astype(jnp.float32)
                  + beta_ref[...].astype(jnp.float32)).astype(o_ref.dtype)


def _bn_apply(y_p, stats, b_p, g_p, beta_p, *, m_valid, tm, tn, eps,
              out_dtype, vmem_bytes):
    M_pad, N_pad = y_p.shape
    kernel = functools.partial(_bn_apply_kernel, m_valid=m_valid,
                               n_pad_rows=M_pad - m_valid, eps=eps)
    return pl.pallas_call(
        kernel,
        out_shape=jax.ShapeDtypeStruct((M_pad, N_pad), out_dtype),
        grid_spec=pltpu.PrefetchScalarGridSpec(
            num_scalar_prefetch=0,
            grid=(M_pad // tm, N_pad // tn),
            in_specs=[
                pl.BlockSpec((tm, tn), lambda i, j: (i, j)),
                pl.BlockSpec((8, tn), lambda i, j: (0, j)),
                pl.BlockSpec((1, tn), lambda i, j: (0, j)),
                pl.BlockSpec((1, tn), lambda i, j: (0, j)),
                pl.BlockSpec((1, tn), lambda i, j: (0, j)),
            ],
            out_specs=pl.BlockSpec((tm, tn), lambda i, j: (i, j)),
        ),
        compiler_params=pltpu.CompilerParams(
            dimension_semantics=("parallel", "parallel"),
            vmem_limit_bytes=vmem_bytes),
    )(y_p, stats, b_p, g_p, beta_p)


# ----------------------------------------------------------------------------
# Module wrapper
# ----------------------------------------------------------------------------
class FeatBottleneckPallas:
    """Pallas TPU forward of feat_bootleneck (Linear -> optional train-mode BN)."""

    def __init__(self, feature_dim, bottleneck_dim=256, type="ori", key=None,
                 param_dtype=jnp.float32, eps=1e-5):
        if key is None:
            key = jax.random.PRNGKey(0)
        self.type = type
        self.feature_dim = feature_dim
        self.bottleneck_dim = bottleneck_dim
        self.eps = eps
        self._force_fallback = False    # test hook for the large-batch path

        kw, _ = jax.random.split(key)
        # nn.init.xavier_normal_ on the torch (out, in) weight; stored pre-transposed
        # as (in, out) so the kernel computes x @ W.
        std = math.sqrt(2.0 / (feature_dim + bottleneck_dim))
        w_torch = std * jax.random.normal(
            kw, (bottleneck_dim, feature_dim), dtype=jnp.float32)
        self.w = w_torch.T.astype(param_dtype)                   # (F, D)
        self.b = jnp.zeros((bottleneck_dim,), param_dtype)
        # BatchNorm1d affine params: PyTorch defaults (init_weights only touches the
        # Linear). Running stats are never read in forward (always train-mode stats).
        self.bn_gamma = jnp.ones((bottleneck_dim,), param_dtype)
        self.bn_beta = jnp.zeros((bottleneck_dim,), param_dtype)

        # Tiling fixed at construction; parameters padded ONCE here so no per-call
        # XLA pad of the (F, D) weight sits on the critical path.
        self._tk = min(512, _round_up(feature_dim, 128))
        self._K_pad = _round_up(feature_dim, self._tk)
        self._tn = min(256, _round_up(bottleneck_dim, 128))
        self._N_pad = _round_up(bottleneck_dim, self._tn)

        self._w_p = _pad2d(self.w, self._K_pad, self._N_pad)
        self._b_p = _pad2d(self.b.reshape(1, -1), 1, self._N_pad)
        self._g_p = _pad2d(self.bn_gamma.reshape(1, -1), 1, self._N_pad)
        self._beta_p = _pad2d(self.bn_beta.reshape(1, -1), 1, self._N_pad)

    def __call__(self, x):
        assert x.ndim == 2 and x.shape[1] == self.feature_dim
        out_dtype = x.dtype
        M = x.shape[0]
        N = self.bottleneck_dim
        apply_bn = (self.type == "bn") and (M > 1)

        x_bytes = jnp.dtype(x.dtype).itemsize
        w_bytes = jnp.dtype(self._w_p.dtype).itemsize
        o_bytes = jnp.dtype(out_dtype).itemsize

        M_pad8 = _round_up(M, 8)
        footprint = _fused_footprint(M_pad8, self._K_pad, self._tk, self._tn,
                                     x_bytes, w_bytes, o_bytes)

        if footprint <= _FUSED_VMEM_BUDGET and not self._force_fallback:
            # Single pallas_call: Linear + (optional) BatchNorm fused in the epilogue.
            x_p = _pad2d(x, M_pad8, self._K_pad)
            out = _linear_bn_fused(
                x_p, self._w_p, self._b_p, self._g_p, self._beta_p,
                m_valid=M, apply_bn=apply_bn, eps=self.eps,
                tk=self._tk, tn=self._tn, out_dtype=out_dtype,
                vmem_bytes=_vmem_limit(footprint))
            return out[:M, :N]

        # Large-batch fallback: weight-resident M-tiled linear (+ fused BN stats),
        # then an M-tiled normalization pass.
        tm = min(256, M_pad8)
        M_pad = _round_up(M, tm)
        x_p = _pad2d(x, M_pad, self._K_pad)
        lin_vmem = (2 * tm * self._K_pad * x_bytes
                    + 2 * self._K_pad * self._tn * w_bytes
                    + 4 * tm * self._tn * 4 + (4 << 20))
        res = _linear_resident(x_p, self._w_p, self._b_p, tm=tm, tn=self._tn,
                               out_dtype=out_dtype, want_stats=apply_bn,
                               vmem_bytes=_vmem_limit(lin_vmem))
        if not apply_bn:
            return res[:M, :N]
        y_p, stats = res
        bn_vmem = 6 * tm * self._tn * 4 + (4 << 20)
        out = _bn_apply(y_p, stats, self._b_p, self._g_p, self._beta_p,
                        m_valid=M, tm=tm, tn=self._tn, eps=self.eps,
                        out_dtype=out_dtype, vmem_bytes=_vmem_limit(bn_vmem))
        # NOTE: relu / dropout exist in __init__ of the torch module but are never
        # used in forward, so they are intentionally not implemented.
        return out[:M, :N]


if __name__ == "__main__":
    key = jax.random.PRNGKey(0)
    kx, kp = jax.random.split(key)

    batch, feature_dim, bottleneck_dim = 8, 128, 256
    x = jax.random.normal(kx, (batch, feature_dim), dtype=jnp.float32)

    def bn_ref(lin, gamma, beta, eps=1e-5):
        mean = lin.mean(axis=0, keepdims=True)
        var = ((lin - mean) ** 2).mean(axis=0, keepdims=True)
        return (lin - mean) * jax.lax.rsqrt(var + eps) * gamma + beta

    # --- 'ori' path: Linear only (fused single-call path) ---
    mod = FeatBottleneckPallas(feature_dim, bottleneck_dim, type="ori", key=kp)
    out = jax.block_until_ready(mod(x))
    ref = x @ mod.w + mod.b
    assert out.shape == (batch, bottleneck_dim)
    assert jnp.allclose(out, ref, atol=1e-4, rtol=1e-4)

    # --- 'bn' path: fused Linear + BatchNorm epilogue ---
    mod_bn = FeatBottleneckPallas(feature_dim, bottleneck_dim, type="bn", key=kp)
    out_bn = jax.block_until_ready(mod_bn(x))
    ref_bn = bn_ref(x @ mod_bn.w + mod_bn.b, mod_bn.bn_gamma, mod_bn.bn_beta)
    assert jnp.allclose(out_bn, ref_bn, atol=1e-4, rtol=1e-4)

    # --- odd batch (padding + closed-form BN statistic correction) ---
    x5 = jax.random.normal(kx, (5, feature_dim), dtype=jnp.float32)
    out5 = jax.block_until_ready(mod_bn(x5))
    ref5 = bn_ref(x5 @ mod_bn.w + mod_bn.b, mod_bn.bn_gamma, mod_bn.bn_beta)
    assert jnp.allclose(out5, ref5, atol=1e-3, rtol=1e-3)

    # --- batch == 1 skips BN (PyTorch semantics) ---
    x1 = jax.random.normal(kx, (1, feature_dim), dtype=jnp.float32)
    out1 = jax.block_until_ready(mod_bn(x1))
    assert jnp.allclose(out1, x1 @ mod_bn.w + mod_bn.b, atol=1e-4, rtol=1e-4)

    # --- large-batch fallback (weight-resident linear + M-tiled BN), forced ---
    xl = jax.random.normal(kx, (300, feature_dim), dtype=jnp.float32)
    mod_bn._force_fallback = True
    outl = jax.block_until_ready(mod_bn(xl))
    refl = bn_ref(xl @ mod_bn.w + mod_bn.b, mod_bn.bn_gamma, mod_bn.bn_beta)
    assert jnp.allclose(outl, refl, atol=1e-3, rtol=1e-3)
    mod_bn._force_fallback = False

    # --- bf16 parameters (halved weight stream; f32 accumulation in-kernel) ---
    mod_bf = FeatBottleneckPallas(feature_dim, bottleneck_dim, type="bn", key=kp,
                                  param_dtype=jnp.bfloat16)
    out_bf = jax.block_until_ready(mod_bf(x))
    assert out_bf.shape == (batch, bottleneck_dim)
    assert out_bf.dtype == x.dtype
    assert jnp.all(jnp.isfinite(out_bf))
    assert jnp.allclose(out_bf, ref_bn, atol=1e-1, rtol=1e-1)

    print("KERNEL_OK")
</pallas_src>

<mosaic_0001>
module attributes {stable_mosaic.version = 11 : i64} {
  func.func @_fused_single_k_kernel(%arg0: i32, %arg1: memref<8x128xf32, #tpu.memory_space<vmem>>, %arg2: memref<128x256xf32, #tpu.memory_space<vmem>>, %arg3: memref<1x256xf32, #tpu.memory_space<vmem>>, %arg4: memref<1x256xf32, #tpu.memory_space<vmem>>, %arg5: memref<1x256xf32, #tpu.memory_space<vmem>>, %arg6: memref<8x256xf32, #tpu.memory_space<vmem>>) attributes {dimension_semantics = [#tpu.dimension_semantics<parallel>], iteration_bounds = array<i64: 1>, scalar_prefetch = 0 : i64, scratch_operands = 0 : i64, tpu.core_type = #tpu.core_type<tc>, window_params = [{pipeline_mode = #tpu.pipeline_mode<synchronous>, transform_indices = @transform_0, window_bounds = array<i64: 8, 128>}, {transform_indices = @transform_1, window_bounds = array<i64: 128, 256>}, {transform_indices = @transform_2, window_bounds = array<i64: 1, 256>}, {transform_indices = @transform_3, window_bounds = array<i64: 1, 256>}, {transform_indices = @transform_4, window_bounds = array<i64: 1, 256>}, {transform_indices = @transform_5, window_bounds = array<i64: 8, 256>}]} {
    %c0 = arith.constant 0 : index
    %c0_0 = arith.constant 0 : index
    %0 = vector.load %arg1[%c0, %c0_0] : memref<8x128xf32, #tpu.memory_space<vmem>>, vector<8x128xf32>
    %c0_1 = arith.constant 0 : index
    %c0_2 = arith.constant 0 : index
    %1 = vector.load %arg2[%c0_1, %c0_2] : memref<128x256xf32, #tpu.memory_space<vmem>>, vector<128x256xf32>
    %c0_3 = arith.constant 0 : index
    %c0_4 = arith.constant 0 : index
    %2 = vector.load %arg3[%c0_3, %c0_4] : memref<1x256xf32, #tpu.memory_space<vmem>>, vector<1x256xf32>
    %cst = arith.constant dense<0.000000e+00> : vector<8x256xf32>
    %3 = tpu.matmul %0, %1, %cst {dimension_numbers = #tpu.dot_dimension_numbers<[1], [0], [0], [1], [0, 0, 1, 1], [], []>} : vector<8x128xf32>, vector<128x256xf32>, vector<8x256xf32> -> vector<8x256xf32>
    %4 = vector.broadcast %2 : vector<1x256xf32> to vector<8x256xf32>
    %5 = arith.addf %3, %4 : vector<8x256xf32>
    %c0_5 = arith.constant 0 : index
    %c0_6 = arith.constant 0 : index
    %6 = vector.load %arg6[%c0_5, %c0_6] : memref<8x256xf32, #tpu.memory_space<vmem>>, vector<8x256xf32>
    tpu.vector_store %arg6[%c0_5, %c0_6], %5 {strides = array<i32>} : memref<8x256xf32, #tpu.memory_space<vmem>>, vector<8x256xf32>,
    return
  }
  func.func @transform_0(%arg0: i32) -> (i32, i32) {
    %c0_i32 = arith.constant 0 : i32
    %c0_i32_0 = arith.constant 0 : i32
    %c0_i32_1 = arith.constant 0 : i32
    return %c0_i32, %c0_i32_0 : i32, i32
  }
  func.func @transform_1(%arg0: i32) -> (i32, i32) {
    %c0_i32 = arith.constant 0 : i32
    %c0_i32_0 = arith.constant 0 : i32
    return %c0_i32, %arg0 : i32, i32
  }
  func.func @transform_2(%arg0: i32) -> (i32, i32) {
    %c0_i32 = arith.constant 0 : i32
    %c0_i32_0 = arith.constant 0 : i32
    return %c0_i32, %arg0 : i32, i32
  }
  func.func @transform_3(%arg0: i32) -> (i32, i32) {
    %c0_i32 = arith.constant 0 : i32
    %c0_i32_0 = arith.constant 0 : i32
    return %c0_i32, %arg0 : i32, i32
  }
  func.func @transform_4(%arg0: i32) -> (i32, i32) {
    %c0_i32 = arith.constant 0 : i32
    %c0_i32_0 = arith.constant 0 : i32
    return %c0_i32, %arg0 : i32, i32
  }
  func.func @transform_5(%arg0: i32) -> (i32, i32) {
    %c0_i32 = arith.constant 0 : i32
    %c0_i32_0 = arith.constant 0 : i32
    return %c0_i32, %arg0 : i32, i32
  }
}

</mosaic_0001>

<bundles_post_ra>
// kernel: tpu_custom_call.1
= control target key start
LH: loop header
LB: loop body
LE: loop exit
PB: predicated region body
PF: predicated region fallthrough
CT: control target
= control target key end

     0   :  { %10 = vsyncpa [#allocation3], 0  ;;  %s365_s0 = inlined_call_operand.hbm [shape: f32[8,128], index: 0, kind: input, shape index: {}]   ;;  %s366_s1 = inlined_call_operand.hbm [shape: f32[128,256], index: 1, kind: input, shape index: {}]   ;;  %s367_s2 = inlined_call_operand.hbm [shape: f32[1,256], index: 2, kind: input, shape index: {}]   ;;  %s368_s3 = inlined_call_operand.vmem [shape: f32[1,256], index: 3, kind: input, shape index: {}]   ;;  %s369_s4 = inlined_call_operand.hbm [shape: f32[1,256], index: 4, kind: input, shape index: {}]   ;;  %s370_s5 = inlined_call_operand.hbm [shape: f32[8,256], index: 5, kind: output, shape index: {}]  }
   0x1   :  { %11 = vsyncpa [#allocation6], 0 }
   0x2   :  { %12 = vsyncpa [#allocation9], 0  ;;  %s29_s20 = sshll.u32 %s366_s1, 4  ;;  %s30_s20 = int_to_ptr.hbm [resolvable:$true] %s29_s20 }
   0x3   :  { %13 = vsyncpa [#allocation4], 0  ;;  %s313_s21 = smov [#allocation5]   ;;  %s19_s24 = sshll.u32 %s365_s0, 4  ;;  %s20_s24 = int_to_ptr.hbm [resolvable:$true] %s19_s24 }
   0x4   :  { %s31_s22 = sshll.u32 %s313_s21, 4  ;;  %s314_s25 = smov 256   ;;  %s32_s22 = int_to_ptr.vmem [resolvable:$true] %s31_s22 }
   0x5   :  { %s315_s26 = smov 16   ;;  %s316_s27 = smov [#allocation2]  }
   0x6   :  { %37 = dma.hbm_to_vmem [thread:$0]  %s30_s20, 4096, %s32_s22, [#allocation6], %s314_s25, %s314_s25, %s315_s26  }
   0x7   :  { %s21_s28 = sshll.u32 %s316_s27, 4  ;;  %s43_s6 = sshll.u32 %s367_s2, 4  ;;  %s22_s28 = int_to_ptr.vmem [resolvable:$true] %s21_s28  ;;  %s44_s6 = int_to_ptr.hbm [resolvable:$true] %s43_s6 }
   0x8   :  { %24 = dma.hbm_to_vmem [thread:$0]  %s20_s24, 128, %s22_s28, [#allocation3]  }
   0x9   :  { %s56_s8 = sshll.u32 %s369_s4, 4  ;;  %s317_s9 = smov [#allocation7]   ;;  %s57_s8 = int_to_ptr.hbm [resolvable:$true] %s56_s8 }
   0xa   :  { %s45_s10 = sshll.u32 %s317_s9, 4  ;;  %s318_s0 = smov [#allocation8]   ;;  %s46_s10 = int_to_ptr.vmem [resolvable:$true] %s45_s10 }
   0xb   :  { %48 = dma.hbm_to_vmem [thread:$0]  %s44_s6, 32, %s46_s10, [#allocation6]  }
   0xc   :  { %s58_s11 = sshll.u32 %s318_s0, 4  ;;  %s59_s11 = int_to_ptr.vmem [resolvable:$true] %s58_s11 }
   0xd   :  { %61 = dma.hbm_to_vmem [thread:$0]  %s57_s8, 32, %s59_s11, [#allocation9]  }
   0xe   :  { %305 = dma.done.wait [#allocation3], 128  }
   0xf   :  { %306 = vsyncadd [#allocation3], 4294967168 }
  0x10   :  { %307 = dma.done.wait [#allocation6], 4128  }
  0x11   :  { %308 = vsyncadd [#allocation6], 4294963168 }
  0x12   :  { %309 = dma.done.wait [#allocation9], 32  }
  0x13   :  { %310 = vsyncadd [#allocation9], 4294967264  ;;  %v109_v0 = vld [vmem:[#allocation5 + $0xf0] sm:$0xff]  ;;  %v110_v1 = vld [vmem:[#allocation5 + $0xf8] sm:$0xff]  ;;  %s319_s2 = smov [#allocation10]   ;;  %s166_s14 = sshll.u32 %s370_s5, 4  ;;  %s167_s14 = int_to_ptr.hbm [resolvable:$true] %s166_s14 }
  0x14   :  { %v107_v2 = vld [vmem:[#allocation5 + $0xe0] sm:$0xff]  ;;  %117 = vmatpush.msra.mxu0 %v109_v0  ;;  %137 = vmatpush.msra.mxu1 %v110_v1  ;;  %v108_v3 = vld [vmem:[#allocation5 + $0xe8] sm:$0xff]  ;;  %v105_v4 = vld [vmem:[#allocation5 + $0xd0] sm:$0xff]  ;;  %s164_s4 = sshll.u32 %s319_s2, 4  ;;  %s165_s4 = int_to_ptr.vmem [resolvable:$true] %s164_s4 }
  0x15   :  { %v106_v5 = vld [vmem:[#allocation5 + $0xd8] sm:$0xff]  ;;  %v103_v6 = vld [vmem:[#allocation5 + $0xc0] sm:$0xff]  ;;  %v104_v7 = vld [vmem:[#allocation5 + $0xc8] sm:$0xff] }
  0x16   :  { %118 = vmatpush.msra.mxu0 %v107_v2  ;;  %138 = vmatpush.msra.mxu1 %v108_v3  ;;  %v101_v8 = vld [vmem:[#allocation5 + $0xb0] sm:$0xff]  ;;  %v102_v9 = vld [vmem:[#allocation5 + $0xb8] sm:$0xff]  ;;  %v99_v10 = vld [vmem:[#allocation5 + $0xa0] sm:$0xff] }
  0x17   :  { %v100_v11 = vld [vmem:[#allocation5 + $0xa8] sm:$0xff]  ;;  %v97_v12 = vld [vmem:[#allocation5 + $0x90] sm:$0xff]  ;;  %v98_v13 = vld [vmem:[#allocation5 + $0x98] sm:$0xff] }
  0x18   :  { %119 = vmatpush.msra.mxu0 %v105_v4  ;;  %139 = vmatpush.msra.mxu1 %v106_v5  ;;  %v95_v14 = vld [vmem:[#allocation5 + $0x80] sm:$0xff]  ;;  %v96_v15 = vld [vmem:[#allocation5 + $0x88] sm:$0xff]  ;;  %v93_v16 = vld [vmem:[#allocation5 + $0x70] sm:$0xff] }
  0x19   :  { %v94_v17 = vld [vmem:[#allocation5 + $0x78] sm:$0xff]  ;;  %v91_v18 = vld [vmem:[#allocation5 + $0x60] sm:$0xff]  ;;  %v92_v19 = vld [vmem:[#allocation5 + $0x68] sm:$0xff] }
  0x1a   :  { %120 = vmatpush.msra.mxu0 %v103_v6  ;;  %140 = vmatpush.msra.mxu1 %v104_v7  ;;  %v89_v20 = vld [vmem:[#allocation5 + $0x50] sm:$0xff]  ;;  %v90_v21 = vld [vmem:[#allocation5 + $0x58] sm:$0xff]  ;;  %v87_v22 = vld [vmem:[#allocation5 + $0x40] sm:$0xff] }
  0x1b   :  { %v88_v23 = vld [vmem:[#allocation5 + $0x48] sm:$0xff]  ;;  %v85_v24 = vld [vmem:[#allocation5 + $0x30] sm:$0xff]  ;;  %v86_v25 = vld [vmem:[#allocation5 + $0x38] sm:$0xff] }
  0x1c   :  { %121 = vmatpush.msra.mxu0 %v101_v8  ;;  %141 = vmatpush.msra.mxu1 %v102_v9  ;;  %v83_v26 = vld [vmem:[#allocation5 + $0x20] sm:$0xff]  ;;  %v84_v27 = vld [vmem:[#allocation5 + $0x28] sm:$0xff]  ;;  %v81_v28 = vld [vmem:[#allocation5 + $0x10] sm:$0xff] }
  0x1d   :  { %v82_v29 = vld [vmem:[#allocation5 + $0x18] sm:$0xff]  ;;  %v79_v30 = vld [vmem:[#allocation5] sm:$0xff]  ;;  %v80_v31 = vld [vmem:[#allocation5 + $0x8] sm:$0xff] }
  0x1e   :  { %122 = vmatpush.msra.mxu0 %v99_v10  ;;  %142 = vmatpush.msra.mxu1 %v100_v11  ;;  %v78_v32 = vld [vmem:[#allocation2] sm:$0xff]  ;;  %v111_v33 = vld [vmem:[#allocation7] sm:$0x3] }
  0x1f   :  { %v113_v34 = vperm.slane %v111_v33, 0  ;;  %v114_v35 = vperm.slane %v111_v33, 1 }
  0x20   :  { %123 = vmatpush.msra.mxu0 %v97_v12  ;;  %143 = vmatpush.msra.mxu1 %v98_v13 }
  0x22   :  { %124 = vmatpush.msra.mxu0 %v95_v14  ;;  %144 = vmatpush.msra.mxu1 %v96_v15 }
  0x24   :  { %125 = vmatpush.msra.mxu0 %v93_v16  ;;  %145 = vmatpush.msra.mxu1 %v94_v17 }
  0x26   :  { %126 = vmatpush.msra.mxu0 %v91_v18  ;;  %146 = vmatpush.msra.mxu1 %v92_v19 }
  0x28   :  { %127 = vmatpush.msra.mxu0 %v89_v20  ;;  %147 = vmatpush.msra.mxu1 %v90_v21 }
  0x2a   :  { %128 = vmatpush.msra.mxu0 %v87_v22  ;;  %148 = vmatpush.msra.mxu1 %v88_v23 }
  0x2c   :  { %129 = vmatpush.msra.mxu0 %v85_v24  ;;  %149 = vmatpush.msra.mxu1 %v86_v25 }
  0x2e   :  { %130 = vmatpush.msra.mxu0 %v83_v26  ;;  %150 = vmatpush.msra.mxu1 %v84_v27 }
  0x30   :  { %131 = vmatpush.msra.mxu0 %v81_v28  ;;  %151 = vmatpush.msra.mxu1 %v82_v29 }
  0x32   :  { %132 = vmatpush.msra.mxu0 %v79_v30  ;;  %152 = vmatpush.msra.mxu1 %v80_v31 }
  0x33   :  { %133 = vmatmul.f32.vlgmr.msra.gmra.mxu0 %v78_v32  ;;  %153 = vmatmul.f32.vlgmr.msra.gmra.mxu1 %v78_v32 }
  0xb0   :  { %v134_v36 = vpop.f32.mrf.mxu0  ;;  %v154_v37 = vpop.f32.mrf.mxu1 }
  0xb1   :  { %v135_v38 = vadd.f32 %v134_v36, %v113_v34  ;;  %v155_v39 = vadd.f32 %v154_v37, %v114_v35 }
  0xb3   :  { %157 = vst [vmem:[#allocation10] sm:$0xff] %v135_v38 }
  0xb4   :  { %158 = vst [vmem:[#allocation10 + $0x8] sm:$0xff] %v155_v39 }
  0xb5   :  { %169 = dma.vmem_to_hbm [thread:$0]  %s165_s4, 256, %s167_s14, [#allocation4]  }
  0xb6   :  { %311 = dma.done.wait [#allocation4], 256  }
  0xb7   :  { %312 = vsyncadd [#allocation4], 4294967040 }
  0xb8   :  { %174 = vsyncpa [#allocation3], 1 }
  0xb9   :  { %175 = vsyncpa [#allocation6], 1 }
  0xba   :  { %176 = vsyncpa [#allocation9], 1 }
  0xbb   :  { %177 = vsyncpa [#allocation4], 1 }

</bundles_post_ra>
